<compile_context>
chip_gen: v5e
topology: v5e:2x2
jax: 0.10.0
libtpu: 0.0.40
codegen_flags: <defaults>
</compile_context>

<pallas_src>
import jax
import jax.numpy as jnp
from jax.experimental import pallas as pl
from jax.experimental.pallas import tpu as pltpu

LOG_STD_MIN = -20.0
LOG_STD_MAX = 2.0

HIDDEN = 128


def _round_up(x, m):
    return ((x + m - 1) // m) * m


def _actor_kernel(obs_ref,
                  w1_ref, b1_ref,
                  w2_ref, b2_ref,
                  wh_ref, bh_ref,
                  lo_ref, hi_ref,
                  out_ref):
    # f32 obs -> bf16 in-kernel (saves a wrapper-side XLA cast + HBM round trip).
    x = obs_ref[...].astype(w1_ref.dtype)              # [tile_b, in_dim]

    # layer1 + ReLU  (bf16 matmul, f32 accumulate, f32 bias)
    h1 = jnp.dot(x, w1_ref[...], preferred_element_type=jnp.float32) + b1_ref[...]
    h1 = jnp.maximum(h1, 0.0).astype(w2_ref.dtype)

    # layer2 + ReLU
    h2 = jnp.dot(h1, w2_ref[...], preferred_element_type=jnp.float32) + b2_ref[...]
    h2 = jnp.maximum(h2, 0.0).astype(wh_ref.dtype)

    # fused (mean | log_std | zero-pad) head -> single lane-dense [tile_b, head_pad] store
    y = jnp.dot(h2, wh_ref[...], preferred_element_type=jnp.float32) + bh_ref[...]

    # Row-broadcast clamp: lo/hi are [1, head_pad]; mean / pad lanes carry +-inf
    # bounds so only the log_std lanes are actually clipped.
    out_ref[...] = jnp.minimum(jnp.maximum(y, lo_ref[...]), hi_ref[...])


def actor_forward(obs, params, out_dim, *, max_tile_b=1024, use_core_parallel=False):
    """obs: [B, in_dim] float. params: dict from init_params()["kernel"].

    Returns (mean, log_std), each [B, out_dim] float32.
    """
    B, in_dim = obs.shape
    compute_dtype = params["w1"].dtype
    hidden = params["w1"].shape[1]
    head_pad = params["wh"].shape[1]

    # --- batch tiling ----------------------------------------------------------
    if B <= max_tile_b:
        # Single grid step, full-array block: no padding, no wasted rows, no
        # per-step pipeline overhead (~0.35 us/step matters for this tiny kernel).
        tile_b, b_pad, grid = B, B, (1,)
    else:
        tile_b = _round_up(max_tile_b, 8)
        b_pad = _round_up(B, tile_b)
        grid = (b_pad // tile_b,)

    x = obs                                   # keep f32; cast happens in-kernel
    if b_pad != B:
        x = jnp.pad(x, ((0, b_pad - B), (0, 0)))

    def weight_spec(shape):
        # Grid-invariant: stays VMEM-resident across batch tiles.
        return pl.BlockSpec(shape, lambda i: (0, 0))

    # --- dimension semantics ---------------------------------------------------
    if grid[0] > 1:
        batch_sem = pltpu.CORE_PARALLEL if use_core_parallel else "parallel"
    else:
        batch_sem = "arbitrary"

    # --- cost + VMEM sizing ----------------------------------------------------
    w_itemsize = jnp.dtype(compute_dtype).itemsize
    n_weight_elems = in_dim * hidden + hidden * hidden + hidden * head_pad
    flops = 2 * b_pad * n_weight_elems
    bytes_obs = tile_b * in_dim * 4
    bytes_w = n_weight_elems * w_itemsize
    bytes_bias = (2 * hidden + 3 * head_pad) * 4        # b1, b2, bh, lo, hi
    bytes_out = tile_b * head_pad * 4
    bytes_accessed = (b_pad * in_dim * 4) + bytes_w + bytes_bias + (b_pad * head_pad * 4)
    # Right-sized scoped-VMEM request: double-buffered tiles + weights + slack.
    vmem_limit = 2 * (bytes_obs + bytes_w + bytes_bias + bytes_out) + (2 << 20)

    out = pl.pallas_call(
        _actor_kernel,
        out_shape=jax.ShapeDtypeStruct((b_pad, head_pad), jnp.float32),
        grid_spec=pltpu.PrefetchScalarGridSpec(
            num_scalar_prefetch=0,
            grid=grid,
            in_specs=[
                pl.BlockSpec((tile_b, in_dim), lambda i: (i, 0)),   # obs tile (f32)
                weight_spec((in_dim, hidden)),                      # w1 (bf16)
                weight_spec((1, hidden)),                           # b1 (f32)
                weight_spec((hidden, hidden)),                      # w2 (bf16)
                weight_spec((1, hidden)),                           # b2 (f32)
                weight_spec((hidden, head_pad)),                    # fused head W (bf16)
                weight_spec((1, head_pad)),                         # fused head b (f32)
                weight_spec((1, head_pad)),                         # clamp lo (f32)
                weight_spec((1, head_pad)),                         # clamp hi (f32)
            ],
            out_specs=pl.BlockSpec((tile_b, head_pad), lambda i: (i, 0)),
        ),
        compiler_params=pltpu.CompilerParams(
            dimension_semantics=(batch_sem,),
            vmem_limit_bytes=int(vmem_limit),
        ),
        cost_estimate=pl.CostEstimate(
            flops=flops, transcendentals=0, bytes_accessed=int(bytes_accessed)),
    )(x,
      params["w1"], params["b1"],
      params["w2"], params["b2"],
      params["wh"], params["bh"],
      params["lo"], params["hi"])

    mean = out[:B, :out_dim]
    log_std = out[:B, out_dim:2 * out_dim]
    return mean, log_std


def init_params(key, in_dim, out_dim, hidden=HIDDEN, compute_dtype=jnp.bfloat16):
    """Deterministic synthetic init (mimics nn.Linear's uniform fan-in init).

    Returns:
      raw:    un-fused f32 params (PyTorch-equivalent, for the reference path).
      kernel: bf16 weights with the two heads fused + zero-padded to a lane-dense
              width (round_up(2*out_dim, 128)), f32 biases, and the [1, head_pad]
              clamp lo/hi vectors used by the kernel epilogue.
    """
    ks = jax.random.split(key, 8)

    def lin(kw, kb, fan_in, fan_out):
        bound = 1.0 / jnp.sqrt(jnp.float32(fan_in))
        w = jax.random.uniform(kw, (fan_in, fan_out), jnp.float32, -bound, bound)
        b = jax.random.uniform(kb, (1, fan_out), jnp.float32, -bound, bound)
        return w, b

    w1, b1 = lin(ks[0], ks[1], in_dim, hidden)
    w2, b2 = lin(ks[2], ks[3], hidden, hidden)
    wm, bm = lin(ks[4], ks[5], hidden, out_dim)
    ws, bs = lin(ks[6], ks[7], hidden, out_dim)
    raw = {"w1": w1, "b1": b1, "w2": w2, "b2": b2,
           "wm": wm, "bm": bm, "ws": ws, "bs": bs}

    # Fuse the two heads and zero-pad output lanes to a lane-dense multiple of 128.
    head_pad = max(128, _round_up(2 * out_dim, 128))
    pad = head_pad - 2 * out_dim
    wh = jnp.concatenate([wm, ws, jnp.zeros((hidden, pad), jnp.float32)], axis=1)
    bh = jnp.concatenate([bm, bs, jnp.zeros((1, pad), jnp.float32)], axis=1)

    # Row-broadcast clamp bounds: only the log_std lanes get finite limits.
    lo = jnp.full((1, head_pad), -jnp.inf, jnp.float32)
    hi = jnp.full((1, head_pad), jnp.inf, jnp.float32)
    lo = lo.at[:, out_dim:2 * out_dim].set(LOG_STD_MIN)
    hi = hi.at[:, out_dim:2 * out_dim].set(LOG_STD_MAX)

    kernel = {
        "w1": w1.astype(compute_dtype), "b1": b1,           # biases stay f32
        "w2": w2.astype(compute_dtype), "b2": b2,
        "wh": wh.astype(compute_dtype), "bh": bh,
        "lo": lo, "hi": hi,
    }
    return raw, kernel


def reference_forward(obs, raw, compute_dtype=jnp.float32):
    """Pure-JAX reference matching the PyTorch forward semantics.

    With compute_dtype=bf16 it mirrors the kernel's bf16-weights / f32-accumulate math.
    """
    cd = compute_dtype
    x = obs.astype(cd)
    h1 = jnp.dot(x, raw["w1"].astype(cd), preferred_element_type=jnp.float32) + raw["b1"]
    h1 = jnp.maximum(h1, 0.0).astype(cd)
    h2 = jnp.dot(h1, raw["w2"].astype(cd), preferred_element_type=jnp.float32) + raw["b2"]
    h2 = jnp.maximum(h2, 0.0).astype(cd)
    mean = jnp.dot(h2, raw["wm"].astype(cd), preferred_element_type=jnp.float32) + raw["bm"]
    log_std = jnp.dot(h2, raw["ws"].astype(cd), preferred_element_type=jnp.float32) + raw["bs"]
    log_std = jnp.clip(log_std, LOG_STD_MIN, LOG_STD_MAX)
    return mean, log_std


def _check(mean, log_std, obs, raw_params, B, out_dim):
    assert mean.shape == (B, out_dim) and log_std.shape == (B, out_dim)
    # Tight check vs a reference using the same bf16-weight / f32-accumulate math.
    mean_bf, log_std_bf = reference_forward(obs, raw_params, jnp.bfloat16)
    assert jnp.allclose(mean, mean_bf, atol=1e-3, rtol=1e-3)
    assert jnp.allclose(log_std, log_std_bf, atol=1e-3, rtol=1e-3)
    # Looser check vs the pure-f32 PyTorch-semantics reference (bf16 weight quantization).
    mean_f32, log_std_f32 = reference_forward(obs, raw_params, jnp.float32)
    assert jnp.allclose(mean, mean_f32, atol=5e-2, rtol=5e-2)
    assert jnp.allclose(log_std, log_std_f32, atol=5e-2, rtol=5e-2)
    assert bool(jnp.all(log_std >= LOG_STD_MIN)) and bool(jnp.all(log_std <= LOG_STD_MAX))


if __name__ == "__main__":
    key = jax.random.PRNGKey(0)
    k_obs, k_params = jax.random.split(key)

    B, in_dim, out_dim = 200, 16, 6
    obs = jax.random.normal(k_obs, (B, in_dim), jnp.float32)
    raw_params, kernel_params = init_params(k_params, in_dim, out_dim)

    # Fast path: single grid step, full-array block, no batch padding.
    mean, log_std = actor_forward(obs, kernel_params, out_dim)
    jax.block_until_ready((mean, log_std))
    _check(mean, log_std, obs, raw_params, B, out_dim)

    # Tiled path: force a multi-step grid (4 tiles of 64, pad 200->256) to
    # exercise the batch-tiling / pad-and-slice code path as well.
    mean_t, log_std_t = actor_forward(obs, kernel_params, out_dim, max_tile_b=64)
    jax.block_until_ready((mean_t, log_std_t))
    _check(mean_t, log_std_t, obs, raw_params, B, out_dim)
    assert jnp.allclose(mean, mean_t, atol=1e-5, rtol=1e-5)
    assert jnp.allclose(log_std, log_std_t, atol=1e-5, rtol=1e-5)

    print("KERNEL_OK")
</pallas_src>

<mosaic_0001>
module attributes {stable_mosaic.version = 11 : i64} {
  func.func @_actor_kernel(%arg0: i32, %arg1: memref<200x16xf32, #tpu.memory_space<vmem>>, %arg2: memref<16x128xbf16, #tpu.memory_space<vmem>>, %arg3: memref<1x128xf32, #tpu.memory_space<vmem>>, %arg4: memref<128x128xbf16, #tpu.memory_space<vmem>>, %arg5: memref<1x128xf32, #tpu.memory_space<vmem>>, %arg6: memref<128x128xbf16, #tpu.memory_space<vmem>>, %arg7: memref<1x128xf32, #tpu.memory_space<vmem>>, %arg8: memref<1x128xf32, #tpu.memory_space<vmem>>, %arg9: memref<1x128xf32, #tpu.memory_space<vmem>>, %arg10: memref<200x128xf32, #tpu.memory_space<vmem>>) attributes {dimension_semantics = [#tpu.dimension_semantics<arbitrary>], iteration_bounds = array<i64: 1>, scalar_prefetch = 0 : i64, scratch_operands = 0 : i64, tpu.core_type = #tpu.core_type<tc>, window_params = [{transform_indices = @transform_0, window_bounds = array<i64: 200, 16>}, {pipeline_mode = #tpu.pipeline_mode<synchronous>, transform_indices = @transform_1, window_bounds = array<i64: 16, 128>}, {pipeline_mode = #tpu.pipeline_mode<synchronous>, transform_indices = @transform_2, window_bounds = array<i64: 1, 128>}, {pipeline_mode = #tpu.pipeline_mode<synchronous>, transform_indices = @transform_3, window_bounds = array<i64: 128, 128>}, {pipeline_mode = #tpu.pipeline_mode<synchronous>, transform_indices = @transform_4, window_bounds = array<i64: 1, 128>}, {pipeline_mode = #tpu.pipeline_mode<synchronous>, transform_indices = @transform_5, window_bounds = array<i64: 128, 128>}, {pipeline_mode = #tpu.pipeline_mode<synchronous>, transform_indices = @transform_6, window_bounds = array<i64: 1, 128>}, {pipeline_mode = #tpu.pipeline_mode<synchronous>, transform_indices = @transform_7, window_bounds = array<i64: 1, 128>}, {pipeline_mode = #tpu.pipeline_mode<synchronous>, transform_indices = @transform_8, window_bounds = array<i64: 1, 128>}, {transform_indices = @transform_9, window_bounds = array<i64: 200, 128>}]} {
    %c0 = arith.constant 0 : index
    %c0_0 = arith.constant 0 : index
    %0 = vector.load %arg1[%c0, %c0_0] : memref<200x16xf32, #tpu.memory_space<vmem>>, vector<200x16xf32>
    %1 = arith.truncf %0 : vector<200x16xf32> to vector<200x16xbf16>
    %c0_1 = arith.constant 0 : index
    %c0_2 = arith.constant 0 : index
    %2 = vector.load %arg2[%c0_1, %c0_2] : memref<16x128xbf16, #tpu.memory_space<vmem>>, vector<16x128xbf16>
    %cst = arith.constant dense<0.000000e+00> : vector<200x128xf32>
    %3 = tpu.matmul %1, %2, %cst {dimension_numbers = #tpu.dot_dimension_numbers<[1], [0], [0], [1], [0, 0, 1, 1], [], []>} : vector<200x16xbf16>, vector<16x128xbf16>, vector<200x128xf32> -> vector<200x128xf32>
    %c0_3 = arith.constant 0 : index
    %c0_4 = arith.constant 0 : index
    %4 = vector.load %arg3[%c0_3, %c0_4] : memref<1x128xf32, #tpu.memory_space<vmem>>, vector<1x128xf32>
    %5 = vector.broadcast %4 : vector<1x128xf32> to vector<200x128xf32>
    %6 = arith.addf %3, %5 : vector<200x128xf32>
    %cst_5 = arith.constant 0.000000e+00 : f32
    %7 = vector.broadcast %cst_5 : f32 to vector<200x128xf32>
    %8 = arith.maximumf %6, %7 : vector<200x128xf32>
    %9 = arith.truncf %8 : vector<200x128xf32> to vector<200x128xbf16>
    %c0_6 = arith.constant 0 : index
    %c0_7 = arith.constant 0 : index
    %10 = vector.load %arg4[%c0_6, %c0_7] : memref<128x128xbf16, #tpu.memory_space<vmem>>, vector<128x128xbf16>
    %cst_8 = arith.constant dense<0.000000e+00> : vector<200x128xf32>
    %11 = tpu.matmul %9, %10, %cst_8 {dimension_numbers = #tpu.dot_dimension_numbers<[1], [0], [0], [1], [0, 0, 1, 1], [], []>} : vector<200x128xbf16>, vector<128x128xbf16>, vector<200x128xf32> -> vector<200x128xf32>
    %c0_9 = arith.constant 0 : index
    %c0_10 = arith.constant 0 : index
    %12 = vector.load %arg5[%c0_9, %c0_10] : memref<1x128xf32, #tpu.memory_space<vmem>>, vector<1x128xf32>
    %13 = vector.broadcast %12 : vector<1x128xf32> to vector<200x128xf32>
    %14 = arith.addf %11, %13 : vector<200x128xf32>
    %cst_11 = arith.constant 0.000000e+00 : f32
    %15 = vector.broadcast %cst_11 : f32 to vector<200x128xf32>
    %16 = arith.maximumf %14, %15 : vector<200x128xf32>
    %17 = arith.truncf %16 : vector<200x128xf32> to vector<200x128xbf16>
    %c0_12 = arith.constant 0 : index
    %c0_13 = arith.constant 0 : index
    %18 = vector.load %arg6[%c0_12, %c0_13] : memref<128x128xbf16, #tpu.memory_space<vmem>>, vector<128x128xbf16>
    %cst_14 = arith.constant dense<0.000000e+00> : vector<200x128xf32>
    %19 = tpu.matmul %17, %18, %cst_14 {dimension_numbers = #tpu.dot_dimension_numbers<[1], [0], [0], [1], [0, 0, 1, 1], [], []>} : vector<200x128xbf16>, vector<128x128xbf16>, vector<200x128xf32> -> vector<200x128xf32>
    %c0_15 = arith.constant 0 : index
    %c0_16 = arith.constant 0 : index
    %20 = vector.load %arg7[%c0_15, %c0_16] : memref<1x128xf32, #tpu.memory_space<vmem>>, vector<1x128xf32>
    %21 = vector.broadcast %20 : vector<1x128xf32> to vector<200x128xf32>
    %22 = arith.addf %19, %21 : vector<200x128xf32>
    %c0_17 = arith.constant 0 : index
    %c0_18 = arith.constant 0 : index
    %23 = vector.load %arg8[%c0_17, %c0_18] : memref<1x128xf32, #tpu.memory_space<vmem>>, vector<1x128xf32>
    %24 = vector.broadcast %23 : vector<1x128xf32> to vector<200x128xf32>
    %25 = arith.maximumf %22, %24 : vector<200x128xf32>
    %c0_19 = arith.constant 0 : index
    %c0_20 = arith.constant 0 : index
    %26 = vector.load %arg9[%c0_19, %c0_20] : memref<1x128xf32, #tpu.memory_space<vmem>>, vector<1x128xf32>
    %27 = vector.broadcast %26 : vector<1x128xf32> to vector<200x128xf32>
    %28 = arith.minimumf %25, %27 : vector<200x128xf32>
    %c0_21 = arith.constant 0 : index
    %c0_22 = arith.constant 0 : index
    %29 = vector.load %arg10[%c0_21, %c0_22] : memref<200x128xf32, #tpu.memory_space<vmem>>, vector<200x128xf32>
    tpu.vector_store %arg10[%c0_21, %c0_22], %28 {strides = array<i32>} : memref<200x128xf32, #tpu.memory_space<vmem>>, vector<200x128xf32>,
    return
  }
  func.func @transform_0(%arg0: i32) -> (i32, i32) {
    %c0_i32 = arith.constant 0 : i32
    %c0_i32_0 = arith.constant 0 : i32
    return %arg0, %c0_i32 : i32, i32
  }
  func.func @transform_1(%arg0: i32) -> (i32, i32) {
    %c0_i32 = arith.constant 0 : i32
    %c0_i32_0 = arith.constant 0 : i32
    %c0_i32_1 = arith.constant 0 : i32
    return %c0_i32, %c0_i32_0 : i32, i32
  }
  func.func @transform_2(%arg0: i32) -> (i32, i32) {
    %c0_i32 = arith.constant 0 : i32
    %c0_i32_0 = arith.constant 0 : i32
    %c0_i32_1 = arith.constant 0 : i32
    return %c0_i32, %c0_i32_0 : i32, i32
  }
  func.func @transform_3(%arg0: i32) -> (i32, i32) {
    %c0_i32 = arith.constant 0 : i32
    %c0_i32_0 = arith.constant 0 : i32
    %c0_i32_1 = arith.constant 0 : i32
    return %c0_i32, %c0_i32_0 : i32, i32
  }
  func.func @transform_4(%arg0: i32) -> (i32, i32) {
    %c0_i32 = arith.constant 0 : i32
    %c0_i32_0 = arith.constant 0 : i32
    %c0_i32_1 = arith.constant 0 : i32
    return %c0_i32, %c0_i32_0 : i32, i32
  }
  func.func @transform_5(%arg0: i32) -> (i32, i32) {
    %c0_i32 = arith.constant 0 : i32
    %c0_i32_0 = arith.constant 0 : i32
    %c0_i32_1 = arith.constant 0 : i32
    return %c0_i32, %c0_i32_0 : i32, i32
  }
  func.func @transform_6(%arg0: i32) -> (i32, i32) {
    %c0_i32 = arith.constant 0 : i32
    %c0_i32_0 = arith.constant 0 : i32
    %c0_i32_1 = arith.constant 0 : i32
    return %c0_i32, %c0_i32_0 : i32, i32
  }
  func.func @transform_7(%arg0: i32) -> (i32, i32) {
    %c0_i32 = arith.constant 0 : i32
    %c0_i32_0 = arith.constant 0 : i32
    %c0_i32_1 = arith.constant 0 : i32
    return %c0_i32, %c0_i32_0 : i32, i32
  }
  func.func @transform_8(%arg0: i32) -> (i32, i32) {
    %c0_i32 = arith.constant 0 : i32
    %c0_i32_0 = arith.constant 0 : i32
    %c0_i32_1 = arith.constant 0 : i32
    return %c0_i32, %c0_i32_0 : i32, i32
  }
  func.func @transform_9(%arg0: i32) -> (i32, i32) {
    %c0_i32 = arith.constant 0 : i32
    %c0_i32_0 = arith.constant 0 : i32
    return %arg0, %c0_i32 : i32, i32
  }
}

</mosaic_0001>

<bundles_post_ra>
// kernel: tpu_custom_call.1
= control target key start
LH: loop header
LB: loop body
LE: loop exit
PB: predicated region body
PF: predicated region fallthrough
CT: control target
= control target key end

     0   :  { %vm84_vm0 = vcmask 130048   ;;  %s1150_s0 = inlined_call_operand.vmem [shape: f32[200,16], index: 0, kind: input, shape index: {}]   ;;  %s1151_s1 = inlined_call_operand.vmem [shape: bf16[16,128], index: 1, kind: input, shape index: {}]   ;;  %s1152_s2 = inlined_call_operand.vmem [shape: f32[1,128], index: 2, kind: input, shape index: {}]   ;;  %s1153_s3 = inlined_call_operand.vmem [shape: bf16[128,128], index: 3, kind: input, shape index: {}]   ;;  %s1154_s4 = inlined_call_operand.vmem [shape: f32[1,128], index: 4, kind: input, shape index: {}]   ;;  %s1155_s5 = inlined_call_operand.vmem [shape: bf16[128,128], index: 5, kind: input, shape index: {}]   ;;  %s1156_s6 = inlined_call_operand.vmem [shape: f32[1,128], index: 6, kind: input, shape index: {}]   ;;  %s1157_s7 = inlined_call_operand.vmem [shape: f32[1,128], index: 7, kind: input, shape index: {}]   ;;  %s1158_s8 = inlined_call_operand.vmem [shape: f32[1,128], index: 8, kind: input, shape index: {}]   ;;  %s1159_s9 = inlined_call_operand.hbm [shape: f32[200,128], index: 9, kind: output, shape index: {}]  }
   0x1   :  { %v737_v0 = vld [vmem:[%s1151_s1] sm:$0xff]  ;;  %v35_v2 = vld [vmem:[%s1150_s0 + $0x8] sm:$0xff] }
   0x2   :  { %v34_v1 = vld [vmem:[%s1150_s0] sm:$0xff]  ;;  %131 = vmatpush.bf16.msra.mxu0 %v737_v0  ;;  %754 = vmatpush.bf16.msra.mxu3 %v737_v0 }
   0x3   :  { %v59_v3 = vpack.c.bf16 %v35_v2, %v34_v1 }
   0x4   :  { %14 = vsyncpa [#allocation3], 0  ;;  %v36_v4 = vld [vmem:[%s1150_s0 + $0x10] sm:$0xff]  ;;  %v37_v5 = vld [vmem:[%s1150_s0 + $0x18] sm:$0xff]  ;;  %s644_s30 = sshll.u32 %s1159_s9, 4  ;;  %s806_s10 = smov 128   ;;  %s645_s30 = int_to_ptr.hbm [resolvable:$true] %s644_s30 }
   0x5   :  { %660 = vmatmul.msk.bf16.vlgmr.msra.gmra.mxu0 %vm84_vm0, %v59_v3  ;;  %v60_v6 = vpack.c.bf16 %v37_v5, %v36_v4  ;;  %v38_v7 = vld [vmem:[%s1150_s0 + $0x20] sm:$0xff]  ;;  %v39_v8 = vld [vmem:[%s1150_s0 + $0x28] sm:$0xff]  ;;  %v40_v10 = vld [vmem:[%s1150_s0 + $0x30] sm:$0xff] }
   0x6   :  { %v61_v9 = vpack.c.bf16 %v39_v8, %v38_v7  ;;  %v41_v11 = vld [vmem:[%s1150_s0 + $0x38] sm:$0xff]  ;;  %v42_v13 = vld [vmem:[%s1150_s0 + $0x40] sm:$0xff]  ;;  %v43_v14 = vld [vmem:[%s1150_s0 + $0x48] sm:$0xff] }
   0x7   :  { %v62_v12 = vpack.c.bf16 %v41_v11, %v40_v10  ;;  %v63_v15 = vpack.c.bf16 %v43_v14, %v42_v13  ;;  %v745_v16 = vld [vmem:[%s1153_s3 + $0x38] sm:$0xff]  ;;  %v44_v17 = vld [vmem:[%s1150_s0 + $0x50] sm:$0xff]  ;;  %v743_v21 = vld [vmem:[%s1153_s3 + $0x28] sm:$0xff] }
   0x8   :  { %303 = vmatpush.bf16.msra.mxu1 %v745_v16  ;;  %755 = vmatpush.bf16.msrb.mxu3 %v745_v16  ;;  %v45_v18 = vld [vmem:[%s1150_s0 + $0x58] sm:$0xff]  ;;  %v744_v20 = vld [vmem:[%s1153_s3 + $0x30] sm:$0xff]  ;;  %v742_v22 = vld [vmem:[%s1153_s3 + $0x20] sm:$0xff] }
   0x9   :  { %v64_v19 = vpack.c.bf16 %v45_v18, %v44_v17  ;;  %v46_v23 = vld [vmem:[%s1150_s0 + $0x60] sm:$0xff]  ;;  %v47_v24 = vld [vmem:[%s1150_s0 + $0x68] sm:$0xff]  ;;  %v741_v25 = vld [vmem:[%s1153_s3 + $0x18] sm:$0xff] }
   0xa   :  { %v65_v26 = vpack.c.bf16 %v47_v24, %v46_v23  ;;  %v740_v27 = vld [vmem:[%s1153_s3 + $0x10] sm:$0xff]  ;;  %v739_v28 = vld [vmem:[%s1153_s3 + $0x8] sm:$0xff]  ;;  %v738_v29 = vld [vmem:[%s1153_s3] sm:$0xff] }
   0xb   :  { %v48_v30 = vld [vmem:[%s1150_s0 + $0x70] sm:$0xff]  ;;  %v49_v31 = vld [vmem:[%s1150_s0 + $0x78] sm:$0xff]  ;;  %v50_v33 = vld [vmem:[%s1150_s0 + $0x80] sm:$0xff] }
   0xc   :  { %304 = vmatpush.bf16.msra.mxu1 %v744_v20  ;;  %756 = vmatpush.bf16.msrb.mxu3 %v744_v20  ;;  %v66_v32 = vpack.c.bf16 %v49_v31, %v48_v30  ;;  %v51_v34 = vld [vmem:[%s1150_s0 + $0x88] sm:$0xff]  ;;  %v56_v37 = vld [vmem:[%s1150_s0 + $0xb0] sm:$0xff]  ;;  %v57_v38 = vld [vmem:[%s1150_s0 + $0xb8] sm:$0xff] }
   0xd   :  { %v67_v35 = vpack.c.bf16 %v51_v34, %v50_v33  ;;  %v956_v39 = vld [vmem:[%s1152_s2] ss:$0 sm:$0xff]  ;;  %v70_v40 = vpack.c.bf16 %v57_v38, %v56_v37  ;;  %v52_v46 = vld [vmem:[%s1150_s0 + $0x90] sm:$0xff]  ;;  %v53_v47 = vld [vmem:[%s1150_s0 + $0x98] sm:$0xff] }
   0xe   :  { %v68_v49 = vpack.c.bf16 %v53_v47, %v52_v46  ;;  %v54_v56 = vld [vmem:[%s1150_s0 + $0xa0] sm:$0xff]  ;;  %v55_v57 = vld [vmem:[%s1150_s0 + $0xa8] sm:$0xff]  ;;  %v753_v23 = vld [vmem:[%s1155_s5 + $0x38] sm:$0xff] }
   0xf   :  { %671 = vmatmul.msk.bf16.vlgmr.msra.gmra.mxu3 %vm84_vm0, %v70_v40  ;;  %v69_v59 = vpack.c.bf16 %v55_v57, %v54_v56  ;;  %v58_v61 = vld [vmem:[%s1150_s0 + $0xc0] sm:$0xff]  ;;  %482 = vmatpush.bf16.msra.mxu2 %v753_v23  ;;  %v749_v34 = vld [vmem:[%s1155_s5 + $0x18] sm:$0xff]  ;;  %v748_v38 = vld [vmem:[%s1155_s5 + $0x10] sm:$0xff]  ;;  %s807_s0 = smov 8  }
  0x10   :  { %305 = vmatpush.bf16.msra.mxu1 %v743_v21  ;;  %757 = vmatpush.bf16.msrb.mxu3 %v743_v21  ;;  %v71_v62 = vpack.c.bf16 %v58_v61, %v58_v61  ;;  %v750_v30 = vld [vmem:[%s1155_s5 + $0x20] sm:$0xff] }
  0x11   :  { %v1023_v57 = vld [vmem:[%s1154_s4] ss:$0 sm:$0xff] }
  0x14   :  { %306 = vmatpush.bf16.msra.mxu1 %v742_v22  ;;  %758 = vmatpush.bf16.msrb.mxu3 %v742_v22 }
  0x15   :  { %661 = vmatmul.msk.bf16.gmra.mxu0 %vm84_vm0, %v60_v6 }
  0x18   :  { %307 = vmatpush.bf16.msra.mxu1 %v741_v25  ;;  %759 = vmatpush.bf16.msrb.mxu3 %v741_v25 }
  0x1c   :  { %308 = vmatpush.bf16.msra.mxu1 %v740_v27  ;;  %760 = vmatpush.bf16.msrb.mxu3 %v740_v27  ;;  %v752_v27 = vld [vmem:[%s1155_s5 + $0x30] sm:$0xff] }
  0x1d   :  { %483 = vmatpush.bf16.msra.mxu2 %v752_v27 }
  0x1f   :  { %672 = vmatmul.msk.bf16.gmra.mxu3 %vm84_vm0, %v71_v62 }
  0x20   :  { %309 = vmatpush.bf16.msra.mxu1 %v739_v28  ;;  %761 = vmatpush.bf16.msrb.mxu3 %v739_v28 }
  0x24   :  { %310 = vmatpush.bf16.msra.mxu1 %v738_v29  ;;  %762 = vmatpush.bf16.msrb.mxu3 %v738_v29  ;;  %v751_v29 = vld [vmem:[%s1155_s5 + $0x28] sm:$0xff] }
  0x25   :  { %662 = vmatmul.msk.bf16.gmra.mxu0 %vm84_vm0, %v61_v9  ;;  %484 = vmatpush.bf16.msra.mxu2 %v751_v29 }
  0x28   :  { %763 = vmatpush.bf16.msra.mxu3 %v753_v23 }
  0x29   :  { %485 = vmatpush.bf16.msra.mxu2 %v750_v30 }
  0x2c   :  { %764 = vmatpush.bf16.msra.mxu3 %v752_v27 }
  0x2d   :  { %486 = vmatpush.bf16.msra.mxu2 %v749_v34 }
  0x30   :  { %765 = vmatpush.bf16.msra.mxu3 %v751_v29 }
  0x31   :  { %487 = vmatpush.bf16.msra.mxu2 %v748_v38 }
  0x34   :  { %766 = vmatpush.bf16.msra.mxu3 %v750_v30 }
  0x35   :  { %663 = vmatmul.msk.bf16.gmra.mxu0 %vm84_vm0, %v62_v12 }
  0x38   :  { %767 = vmatpush.bf16.msra.mxu3 %v749_v34 }
  0x3c   :  { %768 = vmatpush.bf16.msra.mxu3 %v748_v38 }
  0x45   :  { %664 = vmatmul.msk.bf16.gmra.mxu0 %vm84_vm0, %v63_v15 }
  0x55   :  { %665 = vmatmul.msk.bf16.gmra.mxu0 %vm84_vm0, %v64_v19 }
  0x65   :  { %666 = vmatmul.msk.bf16.gmra.mxu0 %vm84_vm0, %v65_v26 }
  0x75   :  { %667 = vmatmul.msk.bf16.gmra.mxu0 %vm84_vm0, %v66_v32 }
  0x82   :  { %v133_v36 = vpop.f32.mrf.mxu0 }
  0x83   :  { %v134_v41 = vadd.f32 %v956_v39, %v133_v36 }
  0x85   :  { %668 = vmatmul.msk.bf16.gmra.mxu0 %vm84_vm0, %v67_v35  ;;  %v197_v44 = vmax.f32 %v134_v41, 0.0  ;;  %v747_v41 = vld [vmem:[%s1155_s5 + $0x8] sm:$0xff] }
  0x86   :  { %488 = vmatpush.bf16.msra.mxu2 %v747_v41  ;;  %769 = vmatpush.bf16.msra.mxu3 %v747_v41 }
  0x8a   :  { %v135_v42 = vpop.f32.mrf.mxu0 }
  0x8b   :  { %v136_v43 = vadd.f32 %v956_v39, %v135_v42  ;;  %v746_v42 = vld [vmem:[%s1155_s5] sm:$0xff] }
  0x8c   :  { %489 = vmatpush.bf16.msra.mxu2 %v746_v42  ;;  %770 = vmatpush.bf16.msra.mxu3 %v746_v42 }
  0x8d   :  { %v198_v45 = vmax.f32 %v136_v43, 0.0 }
  0x8f   :  { %v222_v48 = vpack.c.bf16 %v198_v45, %v197_v44 }
  0x91   :  { %311 = vmatmul.bf16.vlgmr.msra.gmra.mxu1 %v222_v48 }
  0x92   :  { %v138_v50 = vpop.f32.mrf.mxu0  ;;  %v188_v62 = vpop.f32.mrf.mxu3 }
  0x93   :  { %v139_v51 = vadd.f32 %v956_v39, %v138_v50 }
  0x95   :  { %669 = vmatmul.msk.bf16.gmra.mxu0 %vm84_vm0, %v68_v49  ;;  %v199_v54 = vmax.f32 %v139_v51, 0.0 }
  0x9a   :  { %v140_v52 = vpop.f32.mrf.mxu0 }
  0x9b   :  { %v141_v53 = vadd.f32 %v956_v39, %v140_v52 }
  0x9d   :  { %v200_v55 = vmax.f32 %v141_v53, 0.0 }
  0x9f   :  { %v223_v58 = vpack.c.bf16 %v200_v55, %v199_v54 }
  0xa1   :  { %316 = vmatmul.bf16.gmra.mxu1 %v223_v58 }
  0xa2   :  { %v143_v60 = vpop.f32.mrf.mxu0 }
  0xa3   :  { %v144_v63 = vadd.f32 %v956_v39, %v143_v60 }
  0xa5   :  { %670 = vmatmul.msk.bf16.gmra.mxu0 %vm84_vm0, %v69_v59  ;;  %v201_v2 = vmax.f32 %v144_v63, 0.0 }
  0xaa   :  { %v145_v0 = vpop.f32.mrf.mxu0 }
  0xab   :  { %v146_v1 = vadd.f32 %v956_v39, %v145_v0 }
  0xad   :  { %v202_v3 = vmax.f32 %v146_v1, 0.0 }
  0xaf   :  { %v224_v4 = vpack.c.bf16 %v202_v3, %v201_v2 }
  0xb1   :  { %321 = vmatmul.bf16.gmra.mxu1 %v224_v4 }
  0xb2   :  { %v148_v5 = vpop.f32.mrf.mxu0 }
  0xb3   :  { %v149_v6 = vadd.f32 %v956_v39, %v148_v5 }
  0xb5   :  { %v203_v9 = vmax.f32 %v149_v6, 0.0 }
  0xba   :  { %v150_v7 = vpop.f32.mrf.mxu0 }
  0xbb   :  { %v151_v8 = vadd.f32 %v956_v39, %v150_v7 }
  0xbd   :  { %v204_v10 = vmax.f32 %v151_v8, 0.0 }
  0xbf   :  { %v225_v11 = vpack.c.bf16 %v204_v10, %v203_v9  ;;  %v190_v10 = vpop.f32.mrf.mxu3 }
  0xc0   :  { %v191_v29 = vadd.f32 %v956_v39, %v190_v10 }
  0xc1   :  { %326 = vmatmul.bf16.gmra.mxu1 %v225_v11 }
  0xc2   :  { %v153_v12 = vpop.f32.mrf.mxu0  ;;  %v220_v34 = vmax.f32 %v191_v29, 0.0 }
  0xc3   :  { %v154_v13 = vadd.f32 %v956_v39, %v153_v12 }
  0xc5   :  { %v205_v16 = vmax.f32 %v154_v13, 0.0 }
  0xca   :  { %v155_v14 = vpop.f32.mrf.mxu0 }
  0xcb   :  { %v156_v15 = vadd.f32 %v956_v39, %v155_v14 }
  0xcd   :  { %v206_v17 = vmax.f32 %v156_v15, 0.0 }
  0xcf   :  { %v226_v18 = vpack.c.bf16 %v206_v17, %v205_v16 }
  0xd1   :  { %331 = vmatmul.bf16.gmra.mxu1 %v226_v18  ;;  %v193_v18 = vpop.f32.mrf.mxu3 }
  0xd2   :  { %v158_v19 = vpop.f32.mrf.mxu0 }
  0xd3   :  { %v159_v20 = vadd.f32 %v956_v39, %v158_v19 }
  0xd5   :  { %v207_v24 = vmax.f32 %v159_v20, 0.0 }
  0xda   :  { %v160_v21 = vpop.f32.mrf.mxu0 }
  0xdb   :  { %v161_v22 = vadd.f32 %v956_v39, %v160_v21 }
  0xdd   :  { %v208_v25 = vmax.f32 %v161_v22, 0.0 }
  0xdf   :  { %v227_v26 = vpack.c.bf16 %v208_v25, %v207_v24  ;;  %v195_v25 = vpop.f32.mrf.mxu3 }
  0xe1   :  { %336 = vmatmul.bf16.gmra.mxu1 %v227_v26 }
  0xe2   :  { %v163_v28 = vpop.f32.mrf.mxu0 }
  0xe3   :  { %v164_v31 = vadd.f32 %v956_v39, %v163_v28  ;;  %v189_v28 = vadd.f32 %v956_v39, %v188_v62 }
  0xe5   :  { %v209_v35 = vmax.f32 %v164_v31, 0.0 }
  0xea   :  { %v165_v32 = vpop.f32.mrf.mxu0 }
  0xeb   :  { %v166_v33 = vadd.f32 %v956_v39, %v165_v32 }
  0xed   :  { %v210_v36 = vmax.f32 %v166_v33, 0.0  ;;  %v219_v33 = vmax.f32 %v189_v28, 0.0 }
  0xef   :  { %v228_v37 = vpack.c.bf16 %v210_v36, %v209_v35 }
  0xf1   :  { %341 = vmatmul.bf16.gmra.mxu1 %v228_v37  ;;  %v233_v37 = vpack.c.bf16 %v220_v34, %v219_v33 }
  0xf2   :  { %v168_v40 = vpop.f32.mrf.mxu0 }
  0xf3   :  { %v169_v43 = vadd.f32 %v956_v39, %v168_v40  ;;  %v194_v40 = vadd.f32 %v956_v39, %v193_v18 }
  0xf5   :  { %v211_v46 = vmax.f32 %v169_v43, 0.0 }
  0xfa   :  { %v170_v44 = vpop.f32.mrf.mxu0 }
  0xfb   :  { %v171_v45 = vadd.f32 %v956_v39, %v170_v44 }
  0xfd   :  { %v212_v47 = vmax.f32 %v171_v45, 0.0  ;;  %v221_v45 = vmax.f32 %v194_v40, 0.0 }
  0xff   :  { %v229_v48 = vpack.c.bf16 %v212_v47, %v211_v46  ;;  %v234_v47 = vpack.c.bf16 %v221_v45, %v221_v45 }
 0x101   :  { %346 = vmatmul.bf16.gmra.mxu1 %v229_v48 }
 0x102   :  { %v173_v49 = vpop.f32.mrf.mxu0 }
 0x103   :  { %v174_v50 = vadd.f32 %v956_v39, %v173_v49 }
 0x105   :  { %v213_v53 = vmax.f32 %v174_v50, 0.0 }
 0x10a   :  { %v175_v51 = vpop.f32.mrf.mxu0 }
 0x10b   :  { %v176_v52 = vadd.f32 %v956_v39, %v175_v51 }
 0x10d   :  { %v214_v54 = vmax.f32 %v176_v52, 0.0 }
 0x10e   :  { %v312_v55 = vpop.f32.mrf.mxu1 }
 0x10f   :  { %v230_v56 = vpack.c.bf16 %v214_v54, %v213_v53  ;;  %v313_v59 = vadd.f32 %v1023_v57, %v312_v55 }
 0x111   :  { %351 = vmatmul.bf16.gmra.mxu1 %v230_v56  ;;  %v376_v63 = vmax.f32 %v313_v59, 0.0 }
 0x112   :  { %v178_v58 = vpop.f32.mrf.mxu0 }
 0x113   :  { %v179_v0 = vadd.f32 %v956_v39, %v178_v58 }
 0x115   :  { %v215_v5 = vmax.f32 %v179_v0, 0.0 }
 0x116   :  { %v314_v60 = vpop.f32.mrf.mxu1 }
 0x117   :  { %v315_v61 = vadd.f32 %v1023_v57, %v314_v60 }
 0x119   :  { %v377_v1 = vmax.f32 %v315_v61, 0.0 }
 0x11a   :  { %v180_v2 = vpop.f32.mrf.mxu0 }
 0x11b   :  { %v181_v3 = vadd.f32 %v956_v39, %v180_v2  ;;  %v401_v4 = vpack.c.bf16 %v377_v1, %v376_v63 }
 0x11d   :  { %v216_v6 = vmax.f32 %v181_v3, 0.0  ;;  %490 = vmatmul.bf16.vlgmr.msra.gmra.mxu2 %v401_v4 }
 0x11e   :  { %v317_v7 = vpop.f32.mrf.mxu1 }
 0x11f   :  { %v231_v8 = vpack.c.bf16 %v216_v6, %v215_v5  ;;  %v318_v11 = vadd.f32 %v1023_v57, %v317_v7 }
 0x121   :  { %356 = vmatmul.bf16.gmra.mxu1 %v231_v8  ;;  %v378_v14 = vmax.f32 %v318_v11, 0.0 }
 0x122   :  { %v183_v9 = vpop.f32.mrf.mxu0 }
 0x123   :  { %v184_v15 = vadd.f32 %v956_v39, %v183_v9 }
 0x125   :  { %v217_v21 = vmax.f32 %v184_v15, 0.0 }
 0x126   :  { %v319_v12 = vpop.f32.mrf.mxu1 }
 0x127   :  { %v320_v13 = vadd.f32 %v1023_v57, %v319_v12 }
 0x129   :  { %v379_v16 = vmax.f32 %v320_v13, 0.0 }
 0x12a   :  { %v185_v17 = vpop.f32.mrf.mxu0 }
 0x12b   :  { %v186_v19 = vadd.f32 %v956_v39, %v185_v17  ;;  %v402_v20 = vpack.c.bf16 %v379_v16, %v378_v14 }
 0x12d   :  { %v218_v22 = vmax.f32 %v186_v19, 0.0  ;;  %495 = vmatmul.bf16.gmra.mxu2 %v402_v20  ;;  %v1053_v19 = vld [vmem:[%s1156_s6] ss:$0 sm:$0xff]  ;;  %s805_s6 = smov [#allocation2]  }
 0x12e   :  { %v322_v23 = vpop.f32.mrf.mxu1 }
 0x12f   :  { %v232_v24 = vpack.c.bf16 %v218_v22, %v217_v21  ;;  %v323_v26 = vadd.f32 %v1023_v57, %v322_v23  ;;  %v1058_v21 = vld [vmem:[%s1157_s7] ss:$0 sm:$0xff]  ;;  %s642_s7 = sshll.u32 %s805_s6, 4  ;;  %s643_s7 = int_to_ptr.vmem [resolvable:$true] %s642_s7 }
 0x131   :  { %361 = vmatmul.bf16.vlgmr.msrb.gmra.mxu3 %v232_v24  ;;  %v380_v31 = vmax.f32 %v323_v26, 0.0  ;;  %v1064_v24 = vld [vmem:[%s1158_s8] ss:$0 sm:$0xff] }
 0x136   :  { %v324_v27 = vpop.f32.mrf.mxu1 }
 0x137   :  { %v325_v30 = vadd.f32 %v1023_v57, %v324_v27 }
 0x139   :  { %v381_v32 = vmax.f32 %v325_v30, 0.0 }
 0x13b   :  { %v403_v35 = vpack.c.bf16 %v381_v32, %v380_v31 }
 0x13d   :  { %500 = vmatmul.bf16.gmra.mxu2 %v403_v35 }
 0x13e   :  { %v327_v36 = vpop.f32.mrf.mxu1 }
 0x13f   :  { %v328_v38 = vadd.f32 %v1023_v57, %v327_v36 }
 0x141   :  { %366 = vmatmul.bf16.gmra.mxu3 %v233_v37  ;;  %v382_v43 = vmax.f32 %v328_v38, 0.0 }
 0x146   :  { %v329_v41 = vpop.f32.mrf.mxu1 }
 0x147   :  { %v330_v42 = vadd.f32 %v1023_v57, %v329_v41 }
 0x149   :  { %v383_v44 = vmax.f32 %v330_v42, 0.0 }
 0x14b   :  { %v404_v46 = vpack.c.bf16 %v383_v44, %v382_v43 }
 0x14d   :  { %505 = vmatmul.bf16.gmra.mxu2 %v404_v46 }
 0x14e   :  { %v332_v48 = vpop.f32.mrf.mxu1 }
 0x14f   :  { %v333_v49 = vadd.f32 %v1023_v57, %v332_v48 }
 0x151   :  { %371 = vmatmul.bf16.gmra.mxu3 %v234_v47  ;;  %v384_v52 = vmax.f32 %v333_v49, 0.0 }
 0x156   :  { %v334_v50 = vpop.f32.mrf.mxu1 }
 0x157   :  { %v335_v51 = vadd.f32 %v1023_v57, %v334_v50 }
 0x159   :  { %v385_v53 = vmax.f32 %v335_v51, 0.0 }
 0x15b   :  { %v405_v54 = vpack.c.bf16 %v385_v53, %v384_v52 }
 0x15d   :  { %510 = vmatmul.bf16.gmra.mxu2 %v405_v54 }
 0x15e   :  { %v337_v39 = vpop.f32.mrf.mxu1 }
 0x15f   :  { %v338_v55 = vadd.f32 %v1023_v57, %v337_v39 }
 0x161   :  { %v386_v59 = vmax.f32 %v338_v55, 0.0 }
 0x166   :  { %v339_v56 = vpop.f32.mrf.mxu1 }
 0x167   :  { %v340_v58 = vadd.f32 %v1023_v57, %v339_v56 }
 0x169   :  { %v387_v60 = vmax.f32 %v340_v58, 0.0 }
 0x16b   :  { %v406_v61 = vpack.c.bf16 %v387_v60, %v386_v59 }
 0x16d   :  { %515 = vmatmul.bf16.gmra.mxu2 %v406_v61 }
 0x16e   :  { %v342_v62 = vpop.f32.mrf.mxu1 }
 0x16f   :  { %v343_v63 = vadd.f32 %v1023_v57, %v342_v62 }
 0x171   :  { %v388_v2 = vmax.f32 %v343_v63, 0.0 }
 0x176   :  { %v344_v0 = vpop.f32.mrf.mxu1 }
 0x177   :  { %v345_v1 = vadd.f32 %v1023_v57, %v344_v0 }
 0x179   :  { %v389_v3 = vmax.f32 %v345_v1, 0.0 }
 0x17b   :  { %v407_v4 = vpack.c.bf16 %v389_v3, %v388_v2 }
 0x17d   :  { %520 = vmatmul.bf16.gmra.mxu2 %v407_v4 }
 0x17e   :  { %v347_v5 = vpop.f32.mrf.mxu1 }
 0x17f   :  { %v348_v6 = vadd.f32 %v1023_v57, %v347_v5 }
 0x181   :  { %v390_v9 = vmax.f32 %v348_v6, 0.0 }
 0x186   :  { %v349_v7 = vpop.f32.mrf.mxu1 }
 0x187   :  { %v350_v8 = vadd.f32 %v1023_v57, %v349_v7 }
 0x189   :  { %v391_v10 = vmax.f32 %v350_v8, 0.0 }
 0x18b   :  { %v408_v11 = vpack.c.bf16 %v391_v10, %v390_v9 }
 0x18d   :  { %525 = vmatmul.bf16.gmra.mxu2 %v408_v11 }
 0x18e   :  { %v352_v12 = vpop.f32.mrf.mxu1 }
 0x18f   :  { %v353_v13 = vadd.f32 %v1023_v57, %v352_v12 }
 0x191   :  { %v392_v16 = vmax.f32 %v353_v13, 0.0 }
 0x196   :  { %v354_v14 = vpop.f32.mrf.mxu1 }
 0x197   :  { %v355_v15 = vadd.f32 %v1023_v57, %v354_v14 }
 0x199   :  { %v393_v17 = vmax.f32 %v355_v15, 0.0 }
 0x19b   :  { %v409_v18 = vpack.c.bf16 %v393_v17, %v392_v16 }
 0x19d   :  { %530 = vmatmul.bf16.gmra.mxu2 %v409_v18 }
 0x19e   :  { %v357_v20 = vpop.f32.mrf.mxu1 }
 0x19f   :  { %v358_v26 = vadd.f32 %v1023_v57, %v357_v20 }
 0x1a0   :  { %v491_v22 = vpop.f32.mrf.mxu2 }
 0x1a1   :  { %v492_v23 = vadd.f32 %v1053_v19, %v491_v22  ;;  %v394_v31 = vmax.f32 %v358_v26, 0.0 }
 0x1a3   :  { %v559_v25 = vmax.f32 %v492_v23, %v1058_v21 }
 0x1a5   :  { %v588_v27 = vmin.f32 %v559_v25, %v1064_v24 }
 0x1a6   :  { %v359_v28 = vpop.f32.mrf.mxu1 }
 0x1a7   :  { %613 = vst [vmem:[#allocation2] sm:$0xff] %v588_v27  ;;  %v360_v29 = vadd.f32 %v1023_v57, %v359_v28 }
 0x1a8   :  { %v493_v30 = vpop.f32.mrf.mxu2 }
 0x1a9   :  { %v395_v32 = vmax.f32 %v360_v29, 0.0  ;;  %v494_v33 = vadd.f32 %v1053_v19, %v493_v30 }
 0x1ab   :  { %v560_v34 = vmax.f32 %v494_v33, %v1058_v21  ;;  %v410_v35 = vpack.c.bf16 %v395_v32, %v394_v31 }
 0x1ad   :  { %v589_v36 = vmin.f32 %v560_v34, %v1064_v24  ;;  %535 = vmatmul.bf16.gmra.mxu2 %v410_v35 }
 0x1af   :  { %614 = vst [vmem:[#allocation2 + $0x8] sm:$0xff] %v589_v36 }
 0x1b0   :  { %v496_v37 = vpop.f32.mrf.mxu2 }
 0x1b1   :  { %v497_v38 = vadd.f32 %v1053_v19, %v496_v37 }
 0x1b3   :  { %v561_v40 = vmax.f32 %v497_v38, %v1058_v21 }
 0x1b4   :  { %v362_v41 = vpop.f32.mrf.mxu3 }
 0x1b5   :  { %v590_v42 = vmin.f32 %v561_v40, %v1064_v24  ;;  %v363_v45 = vadd.f32 %v1023_v57, %v362_v41 }
 0x1b7   :  { %615 = vst [vmem:[#allocation2 + $0x10] sm:$0xff] %v590_v42  ;;  %v396_v50 = vmax.f32 %v363_v45, 0.0 }
 0x1b8   :  { %v498_v43 = vpop.f32.mrf.mxu2 }
 0x1b9   :  { %v499_v44 = vadd.f32 %v1053_v19, %v498_v43 }
 0x1bb   :  { %v562_v46 = vmax.f32 %v499_v44, %v1058_v21 }
 0x1bc   :  { %v364_v47 = vpop.f32.mrf.mxu3 }
 0x1bd   :  { %v591_v48 = vmin.f32 %v562_v46, %v1064_v24  ;;  %v365_v49 = vadd.f32 %v1023_v57, %v364_v47 }
 0x1bf   :  { %616 = vst [vmem:[#allocation2 + $0x18] sm:$0xff] %v591_v48  ;;  %v397_v51 = vmax.f32 %v365_v49, 0.0 }
 0x1c0   :  { %v501_v52 = vpop.f32.mrf.mxu2 }
 0x1c1   :  { %v411_v53 = vpack.c.bf16 %v397_v51, %v396_v50  ;;  %v502_v54 = vadd.f32 %v1053_v19, %v501_v52 }
 0x1c3   :  { %v563_v39 = vmax.f32 %v502_v54, %v1058_v21  ;;  %540 = vmatmul.bf16.vlgmr.msra.gmra.mxu3 %v411_v53 }
 0x1c4   :  { %v367_v55 = vpop.f32.mrf.mxu3 }
 0x1c5   :  { %v592_v56 = vmin.f32 %v563_v39, %v1064_v24  ;;  %v368_v60 = vadd.f32 %v1023_v57, %v367_v55 }
 0x1c7   :  { %617 = vst [vmem:[#allocation2 + $0x20] sm:$0xff] %v592_v56  ;;  %v398_v1 = vmax.f32 %v368_v60, 0.0 }
 0x1c8   :  { %v503_v58 = vpop.f32.mrf.mxu2 }
 0x1c9   :  { %v504_v59 = vadd.f32 %v1053_v19, %v503_v58 }
 0x1cb   :  { %v564_v61 = vmax.f32 %v504_v59, %v1058_v21 }
 0x1cc   :  { %v369_v62 = vpop.f32.mrf.mxu3 }
 0x1cd   :  { %v593_v63 = vmin.f32 %v564_v61, %v1064_v24  ;;  %v370_v0 = vadd.f32 %v1023_v57, %v369_v62 }
 0x1cf   :  { %618 = vst [vmem:[#allocation2 + $0x28] sm:$0xff] %v593_v63  ;;  %v399_v2 = vmax.f32 %v370_v0, 0.0 }
 0x1d0   :  { %v506_v3 = vpop.f32.mrf.mxu2 }
 0x1d1   :  { %v507_v4 = vadd.f32 %v1053_v19, %v506_v3  ;;  %v412_v5 = vpack.c.bf16 %v399_v2, %v398_v1 }
 0x1d3   :  { %v565_v6 = vmax.f32 %v507_v4, %v1058_v21  ;;  %545 = vmatmul.bf16.gmra.mxu3 %v412_v5 }
 0x1d4   :  { %v372_v7 = vpop.f32.mrf.mxu3 }
 0x1d5   :  { %v594_v8 = vmin.f32 %v565_v6, %v1064_v24  ;;  %v373_v9 = vadd.f32 %v1023_v57, %v372_v7 }
 0x1d7   :  { %619 = vst [vmem:[#allocation2 + $0x30] sm:$0xff] %v594_v8  ;;  %v400_v12 = vmax.f32 %v373_v9, 0.0 }
 0x1d8   :  { %v508_v10 = vpop.f32.mrf.mxu2 }
 0x1d9   :  { %v509_v11 = vadd.f32 %v1053_v19, %v508_v10  ;;  %v413_v16 = vpack.c.bf16 %v400_v12, %v400_v12 }
 0x1db   :  { %v566_v13 = vmax.f32 %v509_v11, %v1058_v21 }
 0x1dc   :  { %v374_v14 = vpop.f32.mrf.mxu3 }
 0x1dd   :  { %v595_v15 = vmin.f32 %v566_v13, %v1064_v24 }
 0x1df   :  { %620 = vst [vmem:[#allocation2 + $0x38] sm:$0xff] %v595_v15 }
 0x1e0   :  { %v511_v17 = vpop.f32.mrf.mxu2 }
 0x1e1   :  { %v512_v18 = vadd.f32 %v1053_v19, %v511_v17 }
 0x1e3   :  { %v567_v20 = vmax.f32 %v512_v18, %v1058_v21  ;;  %550 = vmatmul.bf16.gmra.mxu3 %v413_v16 }
 0x1e5   :  { %v596_v22 = vmin.f32 %v567_v20, %v1064_v24 }
 0x1e7   :  { %621 = vst [vmem:[#allocation2 + $0x40] sm:$0xff] %v596_v22 }
 0x1e8   :  { %v513_v57 = vpop.f32.mrf.mxu2 }
 0x1e9   :  { %v514_v23 = vadd.f32 %v1053_v19, %v513_v57 }
 0x1eb   :  { %v568_v25 = vmax.f32 %v514_v23, %v1058_v21 }
 0x1ed   :  { %v597_v26 = vmin.f32 %v568_v25, %v1064_v24 }
 0x1ef   :  { %622 = vst [vmem:[#allocation2 + $0x48] sm:$0xff] %v597_v26 }
 0x1f0   :  { %v516_v27 = vpop.f32.mrf.mxu2 }
 0x1f1   :  { %v517_v28 = vadd.f32 %v1053_v19, %v516_v27 }
 0x1f3   :  { %v569_v29 = vmax.f32 %v517_v28, %v1058_v21 }
 0x1f5   :  { %v598_v30 = vmin.f32 %v569_v29, %v1064_v24 }
 0x1f7   :  { %623 = vst [vmem:[#allocation2 + $0x50] sm:$0xff] %v598_v30 }
 0x1f8   :  { %v518_v31 = vpop.f32.mrf.mxu2 }
 0x1f9   :  { %v519_v32 = vadd.f32 %v1053_v19, %v518_v31 }
 0x1fb   :  { %v570_v33 = vmax.f32 %v519_v32, %v1058_v21 }
 0x1fd   :  { %v599_v34 = vmin.f32 %v570_v33, %v1064_v24 }
 0x1ff   :  { %624 = vst [vmem:[#allocation2 + $0x58] sm:$0xff] %v599_v34 }
 0x200   :  { %v521_v35 = vpop.f32.mrf.mxu2 }
 0x201   :  { %v522_v36 = vadd.f32 %v1053_v19, %v521_v35 }
 0x203   :  { %v571_v37 = vmax.f32 %v522_v36, %v1058_v21 }
 0x205   :  { %v600_v38 = vmin.f32 %v571_v37, %v1064_v24 }
 0x207   :  { %625 = vst [vmem:[#allocation2 + $0x60] sm:$0xff] %v600_v38 }
 0x208   :  { %v523_v40 = vpop.f32.mrf.mxu2 }
 0x209   :  { %v524_v41 = vadd.f32 %v1053_v19, %v523_v40 }
 0x20b   :  { %v572_v42 = vmax.f32 %v524_v41, %v1058_v21 }
 0x20d   :  { %v601_v43 = vmin.f32 %v572_v42, %v1064_v24 }
 0x20f   :  { %626 = vst [vmem:[#allocation2 + $0x68] sm:$0xff] %v601_v43 }
 0x210   :  { %v526_v44 = vpop.f32.mrf.mxu2 }
 0x211   :  { %v527_v45 = vadd.f32 %v1053_v19, %v526_v44 }
 0x213   :  { %v573_v46 = vmax.f32 %v527_v45, %v1058_v21 }
 0x215   :  { %v602_v47 = vmin.f32 %v573_v46, %v1064_v24 }
 0x217   :  { %627 = vst [vmem:[#allocation2 + $0x70] sm:$0xff] %v602_v47 }
 0x218   :  { %v528_v48 = vpop.f32.mrf.mxu2 }
 0x219   :  { %v529_v49 = vadd.f32 %v1053_v19, %v528_v48 }
 0x21b   :  { %v574_v50 = vmax.f32 %v529_v49, %v1058_v21 }
 0x21d   :  { %v603_v51 = vmin.f32 %v574_v50, %v1064_v24 }
 0x21f   :  { %628 = vst [vmem:[#allocation2 + $0x78] sm:$0xff] %v603_v51 }
 0x220   :  { %v531_v52 = vpop.f32.mrf.mxu2 }
 0x221   :  { %v532_v53 = vadd.f32 %v1053_v19, %v531_v52 }
 0x223   :  { %v575_v54 = vmax.f32 %v532_v53, %v1058_v21 }
 0x225   :  { %v604_v39 = vmin.f32 %v575_v54, %v1064_v24 }
 0x227   :  { %629 = vst [vmem:[#allocation2 + $0x80] sm:$0xff] %v604_v39 }
 0x228   :  { %v533_v55 = vpop.f32.mrf.mxu2 }
 0x229   :  { %v534_v56 = vadd.f32 %v1053_v19, %v533_v55 }
 0x22b   :  { %v576_v58 = vmax.f32 %v534_v56, %v1058_v21 }
 0x22d   :  { %v605_v59 = vmin.f32 %v576_v58, %v1064_v24 }
 0x22f   :  { %630 = vst [vmem:[#allocation2 + $0x88] sm:$0xff] %v605_v59 }
 0x230   :  { %v536_v60 = vpop.f32.mrf.mxu2 }
 0x231   :  { %v537_v61 = vadd.f32 %v1053_v19, %v536_v60 }
 0x233   :  { %v577_v62 = vmax.f32 %v537_v61, %v1058_v21 }
 0x235   :  { %v606_v63 = vmin.f32 %v577_v62, %v1064_v24 }
 0x237   :  { %631 = vst [vmem:[#allocation2 + $0x90] sm:$0xff] %v606_v63 }
 0x238   :  { %v538_v0 = vpop.f32.mrf.mxu2 }
 0x239   :  { %v539_v1 = vadd.f32 %v1053_v19, %v538_v0 }
 0x23b   :  { %v578_v2 = vmax.f32 %v539_v1, %v1058_v21 }
 0x23d   :  { %v607_v3 = vmin.f32 %v578_v2, %v1064_v24 }
 0x23f   :  { %632 = vst [vmem:[#allocation2 + $0x98] sm:$0xff] %v607_v3 }
 0x246   :  { %v541_v4 = vpop.f32.mrf.mxu3 }
 0x247   :  { %v542_v5 = vadd.f32 %v1053_v19, %v541_v4 }
 0x249   :  { %v579_v6 = vmax.f32 %v542_v5, %v1058_v21 }
 0x24b   :  { %v608_v7 = vmin.f32 %v579_v6, %v1064_v24 }
 0x24d   :  { %633 = vst [vmem:[#allocation2 + $0xa0] sm:$0xff] %v608_v7 }
 0x24e   :  { %v543_v8 = vpop.f32.mrf.mxu3 }
 0x24f   :  { %v544_v9 = vadd.f32 %v1053_v19, %v543_v8 }
 0x251   :  { %v580_v10 = vmax.f32 %v544_v9, %v1058_v21 }
 0x253   :  { %v609_v11 = vmin.f32 %v580_v10, %v1064_v24 }
 0x255   :  { %634 = vst [vmem:[#allocation2 + $0xa8] sm:$0xff] %v609_v11 }
 0x256   :  { %v546_v12 = vpop.f32.mrf.mxu3 }
 0x257   :  { %v547_v13 = vadd.f32 %v1053_v19, %v546_v12 }
 0x259   :  { %v581_v14 = vmax.f32 %v547_v13, %v1058_v21 }
 0x25b   :  { %v610_v15 = vmin.f32 %v581_v14, %v1064_v24 }
 0x25d   :  { %635 = vst [vmem:[#allocation2 + $0xb0] sm:$0xff] %v610_v15 }
 0x25e   :  { %v548_v16 = vpop.f32.mrf.mxu3 }
 0x25f   :  { %v549_v17 = vadd.f32 %v1053_v19, %v548_v16 }
 0x261   :  { %v582_v18 = vmax.f32 %v549_v17, %v1058_v21 }
 0x263   :  { %v611_v20 = vmin.f32 %v582_v18, %v1064_v24 }
 0x265   :  { %636 = vst [vmem:[#allocation2 + $0xb8] sm:$0xff] %v611_v20 }
 0x266   :  { %v551_v22 = vpop.f32.mrf.mxu3 }
 0x267   :  { %v552_v57 = vadd.f32 %v1053_v19, %v551_v22 }
 0x269   :  { %v583_v23 = vmax.f32 %v552_v57, %v1058_v21 }
 0x26b   :  { %v612_v25 = vmin.f32 %v583_v23, %v1064_v24 }
 0x26d   :  { %637 = vst [vmem:[#allocation2 + $0xc0] sm:$0xff] %v612_v25 }
 0x26e   :  { %v553_v26 = vpop.f32.mrf.mxu3  ;;  %650 = dma.vmem_to_hbm [thread:$0]  %s643_s7, 3200, %s645_s30, [#allocation3], %s806_s10, %s806_s10, %s807_s0  }
 0x26f   :  { %803 = dma.done.wait [#allocation3], 3200  }
 0x270   :  { %804 = vsyncadd [#allocation3], 4294964096 }
 0x271   :  { %655 = vsyncpa [#allocation3], 1 }

</bundles_post_ra>
